<compile_context>
chip_gen: v5e
topology: v5e:2x2
jax: 0.10.0
libtpu: 0.0.40
codegen_flags: <defaults>
</compile_context>

<pallas_src>
import functools

import jax
import jax.numpy as jnp
from jax.experimental import pallas as pl
from jax.experimental.pallas import tpu as pltpu


def _ce2d_kernel(logits_ref, target_ref, sum_ref, cnt_ref, *,
                 ignore_label, hw, tile):
    i = pl.program_id(1)                      # pixel-tile index (reduction axis)

    @pl.when(i == 0)
    def _():
        sum_ref[...] = jnp.zeros_like(sum_ref)
        cnt_ref[...] = jnp.zeros_like(cnt_ref)

    logits = logits_ref[0].astype(jnp.float32)      # (C, T): classes on sublanes
    tgt = target_ref[0]                             # (1, T) int32

    # valid = in-bounds pixel AND a real (non-ignored) label.  The position
    # mask also handles the ragged last tile (no input padding anywhere).
    pos = jax.lax.broadcasted_iota(jnp.int32, tgt.shape, 1) + i * tile
    valid = jnp.logical_and(jnp.logical_and(tgt >= 0, tgt != ignore_label),
                            pos < hw)               # (1, T) bool

    # numerically-stable logsumexp over the class (sublane) axis
    m = jnp.max(logits, axis=0, keepdims=True)                          # (1, T)
    lse = m + jnp.log(jnp.sum(jnp.exp(logits - m), axis=0, keepdims=True))

    # logit at the target class: masked sum over classes (no one-hot f32 temp)
    class_ids = jax.lax.broadcasted_iota(jnp.int32, logits.shape, 0)    # (C, T)
    picked = jnp.sum(jnp.where(class_ids == tgt, logits, 0.0),
                     axis=0, keepdims=True)                             # (1, T)

    # lane-wide partial accumulation (pure VPU adds); scalar reduce happens
    # once, outside the kernel.
    sum_ref[0] += jnp.where(valid, lse - picked, 0.0)
    cnt_ref[0] += valid.astype(jnp.float32)


def _choose_tile(hw, c, tile_pixels):
    """Pick a lane-tile size: big (HBM-bound kernel), multiple of 128 or == hw."""
    # Keep the double-buffered f32 logits block around <= 4 MiB of VMEM.
    max_by_vmem = max(128, (4 * 1024 * 1024) // max(1, c * 4 * 2))
    tile = min(tile_pixels, max_by_vmem)
    if tile >= hw:
        return hw                              # single full-width tile (legal)
    tile = max(128, (tile // 128) * 128)       # multiple of 128 for the lane dim
    return hw if tile >= hw else tile


def cross_entropy_2d(predict, target, *, size_average=True, ignore_label=255,
                     tile_pixels=2048):
    """predict: (n, c, h, w) float; target: (n, h, w) int. Returns scalar loss."""
    # TODO(synk): optional per-class `weight` rescaling is not implemented
    # (matches the default weight=None path of the PyTorch module).
    n, c, h, w = predict.shape
    assert target.shape == (n, h, w)
    hw = h * w

    # Free, contiguous reshapes — no transpose, no padding, no extra HBM traffic.
    logits = predict.reshape(n, c, hw)
    tgt = target.reshape(n, 1, hw).astype(jnp.int32)

    tile = _choose_tile(hw, c, tile_pixels)
    num_tiles = pl.cdiv(hw, tile)

    kernel = functools.partial(_ce2d_kernel, ignore_label=ignore_label,
                               hw=hw, tile=tile)

    bytes_accessed = int(logits.size * logits.dtype.itemsize
                         + tgt.size * 4 + 2 * n * tile * 4)
    cost = pl.CostEstimate(flops=6 * n * hw * c,
                           transcendentals=n * hw * (c + 1),
                           bytes_accessed=bytes_accessed)

    part_sum, part_cnt = pl.pallas_call(
        kernel,
        out_shape=(
            jax.ShapeDtypeStruct((n, 1, tile), jnp.float32),
            jax.ShapeDtypeStruct((n, 1, tile), jnp.float32),
        ),
        grid_spec=pltpu.PrefetchScalarGridSpec(
            num_scalar_prefetch=0,
            grid=(n, num_tiles),
            in_specs=[
                pl.BlockSpec((1, c, tile), lambda b, i: (b, 0, i)),
                pl.BlockSpec((1, 1, tile), lambda b, i: (b, 0, i)),
            ],
            out_specs=(
                pl.BlockSpec((1, 1, tile), lambda b, i: (b, 0, 0)),
                pl.BlockSpec((1, 1, tile), lambda b, i: (b, 0, 0)),
            ),
        ),
        compiler_params=pltpu.CompilerParams(
            dimension_semantics=("parallel", "arbitrary")),
        cost_estimate=cost,
    )(logits, tgt)

    s = jnp.sum(part_sum)
    cnt = jnp.sum(part_cnt)

    if size_average:
        # F.cross_entropy(size_average=True) divides by #valid pixels.
        loss = s / jnp.maximum(cnt, 1.0)
    else:
        loss = s
    # PyTorch module returns zeros(1) when there are no valid targets.
    return jnp.where(cnt > 0, loss, 0.0)


def _reference_jax(predict, target, *, ignore_label=255):
    n, c, h, w = predict.shape
    logits = jnp.transpose(predict, (0, 2, 3, 1)).reshape(-1, c).astype(jnp.float32)
    tgt = target.reshape(-1).astype(jnp.int32)
    valid = jnp.logical_and(tgt >= 0, tgt != ignore_label)
    lse = jax.nn.logsumexp(logits, axis=-1)
    safe_tgt = jnp.where(valid, tgt, 0)
    picked = jnp.take_along_axis(logits, safe_tgt[:, None], axis=-1)[:, 0]
    loss = jnp.where(valid, lse - picked, 0.0)
    cnt = jnp.sum(valid.astype(jnp.float32))
    return jnp.where(cnt > 0, jnp.sum(loss) / jnp.maximum(cnt, 1.0), 0.0)


if __name__ == "__main__":
    key = jax.random.PRNGKey(0)
    k1, k2, k3 = jax.random.split(key, 3)

    n, c, h, w = 2, 4, 16, 16
    predict = jax.random.normal(k1, (n, c, h, w), dtype=jnp.float32)
    target = jax.random.randint(k2, (n, h, w), 0, c, dtype=jnp.int32)
    # sprinkle in some ignore_label pixels
    drop = jax.random.uniform(k3, (n, h, w)) < 0.2
    target = jnp.where(drop, 255, target)

    loss = cross_entropy_2d(predict, target, size_average=True, ignore_label=255)
    loss = jax.block_until_ready(loss)

    ref = _reference_jax(predict, target, ignore_label=255)
    assert jnp.allclose(loss, ref, atol=1e-5, rtol=1e-5), (loss, ref)

    print("KERNEL_OK")
</pallas_src>

<mosaic_0001>
module attributes {stable_mosaic.version = 11 : i64} {
  func.func @_ce2d_kernel(%arg0: i32, %arg1: i32, %arg2: memref<1x4x256xf32, #tpu.memory_space<vmem>>, %arg3: memref<1x1x256xi32, #tpu.memory_space<vmem>>, %arg4: memref<1x1x256xf32, #tpu.memory_space<vmem>>, %arg5: memref<1x1x256xf32, #tpu.memory_space<vmem>>) attributes {dimension_semantics = [#tpu.dimension_semantics<parallel>, #tpu.dimension_semantics<arbitrary>], iteration_bounds = array<i64: 2, 1>, scalar_prefetch = 0 : i64, scratch_operands = 0 : i64, tpu.core_type = #tpu.core_type<tc>, window_params = [{transform_indices = @transform_0, window_bounds = array<i64: 1, 4, 256>}, {transform_indices = @transform_1, window_bounds = array<i64: 1, 1, 256>}, {transform_indices = @transform_2, window_bounds = array<i64: 1, 1, 256>}, {transform_indices = @transform_3, window_bounds = array<i64: 1, 1, 256>}]} {
    %c0_i32 = arith.constant 0 : i32
    %0 = arith.cmpi eq, %arg1, %c0_i32 : i32
    %1 = arith.extui %0 : i1 to i32
    %c0_i32_0 = arith.constant 0 : i32
    %2 = arith.cmpi ne, %1, %c0_i32_0 : i32
    scf.if %2 {
      %cst_24 = arith.constant 0.000000e+00 : f32
      %52 = vector.broadcast %cst_24 : f32 to vector<1x1x256xf32>
      %c0_25 = arith.constant 0 : index
      %c0_26 = arith.constant 0 : index
      %c0_27 = arith.constant 0 : index
      %53 = vector.load %arg4[%c0_25, %c0_26, %c0_27] : memref<1x1x256xf32, #tpu.memory_space<vmem>>, vector<1x1x256xf32>
      tpu.vector_store %arg4[%c0_25, %c0_26, %c0_27], %52 {strides = array<i32>} : memref<1x1x256xf32, #tpu.memory_space<vmem>>, vector<1x1x256xf32>,
      %cst_28 = arith.constant 0.000000e+00 : f32
      %54 = vector.broadcast %cst_28 : f32 to vector<1x1x256xf32>
      %c0_29 = arith.constant 0 : index
      %c0_30 = arith.constant 0 : index
      %c0_31 = arith.constant 0 : index
      %55 = vector.load %arg5[%c0_29, %c0_30, %c0_31] : memref<1x1x256xf32, #tpu.memory_space<vmem>>, vector<1x1x256xf32>
      tpu.vector_store %arg5[%c0_29, %c0_30, %c0_31], %54 {strides = array<i32>} : memref<1x1x256xf32, #tpu.memory_space<vmem>>, vector<1x1x256xf32>,
    } else {
    }
    %c0 = arith.constant 0 : index
    %c0_1 = arith.constant 0 : index
    %c0_2 = arith.constant 0 : index
    %3 = vector.load %arg2[%c0, %c0_1, %c0_2] : memref<1x4x256xf32, #tpu.memory_space<vmem>>, vector<1x4x256xf32>
    %4 = vector.shape_cast %3 : vector<1x4x256xf32> to vector<4x256xf32>
    %c0_3 = arith.constant 0 : index
    %c0_4 = arith.constant 0 : index
    %c0_5 = arith.constant 0 : index
    %5 = vector.load %arg3[%c0_3, %c0_4, %c0_5] : memref<1x1x256xi32, #tpu.memory_space<vmem>>, vector<1x1x256xi32>
    %6 = vector.shape_cast %5 : vector<1x1x256xi32> to vector<1x256xi32>
    %7 = tpu.iota {dimensions = array<i32: 1>} : vector<1x256xi32>
    %c256_i32 = arith.constant 256 : i32
    %8 = arith.muli %arg1, %c256_i32 : i32
    %9 = vector.broadcast %8 : i32 to vector<1x256xi32>
    %10 = arith.addi %7, %9 : vector<1x256xi32>
    %c0_i32_6 = arith.constant 0 : i32
    %11 = vector.broadcast %c0_i32_6 : i32 to vector<1x256xi32>
    %12 = arith.cmpi sge, %6, %11 : vector<1x256xi32>
    %c255_i32 = arith.constant 255 : i32
    %13 = vector.broadcast %c255_i32 : i32 to vector<1x256xi32>
    %14 = arith.cmpi ne, %6, %13 : vector<1x256xi32>
    %15 = arith.andi %12, %14 : vector<1x256xi1>
    %c256_i32_7 = arith.constant 256 : i32
    %16 = vector.broadcast %c256_i32_7 : i32 to vector<1x256xi32>
    %17 = arith.cmpi slt, %10, %16 : vector<1x256xi32>
    %18 = arith.andi %15, %17 : vector<1x256xi1>
    %cst = arith.constant dense<0xFF800000> : vector<256xf32>
    %19 = vector.multi_reduction <maximumf>, %4, %cst [0] : vector<4x256xf32> to vector<256xf32>
    %20 = vector.shape_cast %19 : vector<256xf32> to vector<1x256xf32>
    %21 = vector.broadcast %20 : vector<1x256xf32> to vector<4x256xf32>
    %22 = arith.subf %4, %21 : vector<4x256xf32>
    %23 = math.exp %22 : vector<4x256xf32>
    %cst_8 = arith.constant dense<0.000000e+00> : vector<256xf32>
    %24 = vector.multi_reduction <add>, %23, %cst_8 [0] : vector<4x256xf32> to vector<256xf32>
    %25 = vector.shape_cast %24 : vector<256xf32> to vector<1x256xf32>
    %26 = math.log %25 : vector<1x256xf32>
    %27 = arith.addf %20, %26 : vector<1x256xf32>
    %28 = tpu.iota {dimensions = array<i32: 0>} : vector<4x256xi32>
    %29 = vector.broadcast %6 : vector<1x256xi32> to vector<4x256xi32>
    %30 = arith.cmpi eq, %28, %29 : vector<4x256xi32>
    %cst_9 = arith.constant 0.000000e+00 : f32
    %31 = vector.broadcast %cst_9 : f32 to vector<4x256xf32>
    %32 = arith.select %30, %4, %31 : vector<4x256xi1>, vector<4x256xf32>
    %cst_10 = arith.constant dense<0.000000e+00> : vector<256xf32>
    %33 = vector.multi_reduction <add>, %32, %cst_10 [0] : vector<4x256xf32> to vector<256xf32>
    %34 = vector.shape_cast %33 : vector<256xf32> to vector<1x256xf32>
    %c0_11 = arith.constant 0 : index
    %c0_12 = arith.constant 0 : index
    %c0_13 = arith.constant 0 : index
    %35 = vector.load %arg4[%c0_11, %c0_12, %c0_13] : memref<1x1x256xf32, #tpu.memory_space<vmem>>, vector<1x1x256xf32>
    %36 = vector.shape_cast %35 : vector<1x1x256xf32> to vector<1x256xf32>
    %37 = arith.subf %27, %34 : vector<1x256xf32>
    %cst_14 = arith.constant 0.000000e+00 : f32
    %38 = vector.broadcast %cst_14 : f32 to vector<1x256xf32>
    %39 = arith.select %18, %37, %38 : vector<1x256xi1>, vector<1x256xf32>
    %40 = arith.addf %36, %39 : vector<1x256xf32>
    %c0_15 = arith.constant 0 : index
    %c0_16 = arith.constant 0 : index
    %c0_17 = arith.constant 0 : index
    %41 = vector.load %arg4[%c0_15, %c0_16, %c0_17] : memref<1x1x256xf32, #tpu.memory_space<vmem>>, vector<1x1x256xf32>
    %42 = vector.shape_cast %41 : vector<1x1x256xf32> to vector<1x256xf32>
    %43 = vector.shape_cast %40 : vector<1x256xf32> to vector<1x1x256xf32>
    tpu.vector_store %arg4[%c0_15, %c0_16, %c0_17], %43 {strides = array<i32>} : memref<1x1x256xf32, #tpu.memory_space<vmem>>, vector<1x1x256xf32>,
    %c0_18 = arith.constant 0 : index
    %c0_19 = arith.constant 0 : index
    %c0_20 = arith.constant 0 : index
    %44 = vector.load %arg5[%c0_18, %c0_19, %c0_20] : memref<1x1x256xf32, #tpu.memory_space<vmem>>, vector<1x1x256xf32>
    %45 = vector.shape_cast %44 : vector<1x1x256xf32> to vector<1x256xf32>
    %46 = arith.extui %18 : vector<1x256xi1> to vector<1x256xi32>
    %47 = arith.sitofp %46 : vector<1x256xi32> to vector<1x256xf32>
    %48 = arith.addf %45, %47 : vector<1x256xf32>
    %c0_21 = arith.constant 0 : index
    %c0_22 = arith.constant 0 : index
    %c0_23 = arith.constant 0 : index
    %49 = vector.load %arg5[%c0_21, %c0_22, %c0_23] : memref<1x1x256xf32, #tpu.memory_space<vmem>>, vector<1x1x256xf32>
    %50 = vector.shape_cast %49 : vector<1x1x256xf32> to vector<1x256xf32>
    %51 = vector.shape_cast %48 : vector<1x256xf32> to vector<1x1x256xf32>
    tpu.vector_store %arg5[%c0_21, %c0_22, %c0_23], %51 {strides = array<i32>} : memref<1x1x256xf32, #tpu.memory_space<vmem>>, vector<1x1x256xf32>,
    return
  }
  func.func @transform_0(%arg0: i32, %arg1: i32) -> (i32, i32, i32) {
    %c0_i32 = arith.constant 0 : i32
    %c0_i32_0 = arith.constant 0 : i32
    return %arg0, %c0_i32, %arg1 : i32, i32, i32
  }
  func.func @transform_1(%arg0: i32, %arg1: i32) -> (i32, i32, i32) {
    %c0_i32 = arith.constant 0 : i32
    %c0_i32_0 = arith.constant 0 : i32
    return %arg0, %c0_i32, %arg1 : i32, i32, i32
  }
  func.func @transform_2(%arg0: i32, %arg1: i32) -> (i32, i32, i32) {
    %c0_i32 = arith.constant 0 : i32
    %c0_i32_0 = arith.constant 0 : i32
    %c0_i32_1 = arith.constant 0 : i32
    return %arg0, %c0_i32, %c0_i32_0 : i32, i32, i32
  }
  func.func @transform_3(%arg0: i32, %arg1: i32) -> (i32, i32, i32) {
    %c0_i32 = arith.constant 0 : i32
    %c0_i32_0 = arith.constant 0 : i32
    %c0_i32_1 = arith.constant 0 : i32
    return %arg0, %c0_i32, %c0_i32_0 : i32, i32, i32
  }
}

</mosaic_0001>

<bundles_post_ra>
// kernel: tpu_custom_call.1
= control target key start
LH: loop header
LB: loop body
LE: loop exit
PB: predicated region body
PF: predicated region fallthrough
CT: control target
= control target key end

     0   :  { %9 = vsyncpa [#allocation3], 0  ;;  %s1084_s0 = inlined_call_operand.hbm [shape: f32[2,4,256], index: 0, kind: input, shape index: {}]   ;;  %s1085_s1 = inlined_call_operand.hbm [shape: s32[2,1,256], index: 1, kind: input, shape index: {}]   ;;  %s1086_s2 = inlined_call_operand.hbm [shape: f32[2,1,256], index: 2, kind: output, shape index: {0}]   ;;  %s1087_s3 = inlined_call_operand.hbm [shape: f32[2,1,256], index: 3, kind: output, shape index: {1}]  }
   0x1   :  { %11 = vsyncpa [#allocation3 + $0x1], 0 }
   0x2   :  { %12 = vsyncpa [#allocation6], 0 }
   0x3   :  { %14 = vsyncpa [#allocation6 + $0x1], 0 }
   0x4   :  { %15 = vsyncpa [#allocation4], 0 }
   0x5   :  { %17 = vsyncpa [#allocation4 + $0x1], 0 }
   0x6   :  { %18 = vsyncpa [#allocation9], 0 }
   0x7   :  { %20 = vsyncpa [#allocation9 + $0x1], 0  ;;  %s872_s12 = smov 0   ;;  %s874_s13 = smov 0  }
   0x8   :  { %s876_s14 = smov 0   ;;  %s878_s15 = smov 0  }
   0x9   :  { %s880_s16 = smov 0   ;;  %s882_s17 = smov 0  }
   0xa LB: > { %s568_s18 = sadd.s32 4294967295, %s848_s17   ;;  %s569_s19 = sadd.s32 4294967294, %s848_s17   ;;  %s848_s17 = sphi %s882_s17, %s26_s17   ;;  %s844_s16 = sphi %s880_s16, %s1101_s16   ;;  %s840_s15 = sphi %s878_s15, %s1100_s15   ;;  %s836_s14 = sphi %s876_s14, %s1099_s14   ;;  %s832_s13 = sphi %s874_s13, %s1098_s13   ;;  %s828_s12 = sphi %s872_s12, %s1097_s12  }
   0xb   : > { %s38_s20 = sadd.s32 1, %s844_s16  ;;  %s47_s21 = sadd.s32 1, %s836_s14 }
   0xc   : > { %p40_p0 = scmp.ge.s32.totalorder %s38_s20, 2  ;;  %p54_p1 = scmp.ne.s32.totalorder %s836_s14, %s832_s13 }
   0xd   : > { %p55_p2 = scmp.eq.s32.totalorder %s848_s17, 0  ;;  %p60_p3 = scmp.ne.s32.totalorder %s832_s13, %s828_s12 }
   0xe   : > { %s1103_s20 = smov (%p40_p0, %s38_s20), 0  ;;  %p61_p5 = scmp.eq.s32.totalorder %s568_s18, 0 }
   0xf   : > { %p913_p4 = por %p55_p2, %p54_p1  ;;  %s42_s23 = ssub.s32 %s844_s16, %s1103_s20 }
  0x10   : > { %p112_p6 = scmp.eq.s32.totalorder %s568_s18, 1  ;;  %p45_p7 = scmp.eq.s32.totalorder %s42_s23, 0 }
  0x11   : > { %p919_p8 = por %p61_p5, %p60_p3  ;;  %p118_p10 = scmp.eq.s32.totalorder %s569_s19, 1 }
  0x12   : > { %p923_p9 = por %p112_p6, %p54_p1  ;;  %p571_p12 = scmp.ge.s32.totalorder %s848_s17, 2 }
  0x13   : > { %s928_s26 = scalar_select %p45_p7, %s836_s14, %s47_s21  }
  0x14   : > { %p930_p11 = por %p118_p10, %p60_p3  ;;  %p612_p13 = scmp.lt.s32.totalorder %s848_s17, 2 }
  0x15   : > { %s164_s28 = sand.u32 1, %s836_s14   ;;  %s589_s30 = sshll.u32 %s844_s16, 3 }
  0x16   : > { %s572_s29 = sshll.u32 %s164_s28, 3  ;;  %s175_s6 = scalar_lea.hbm %s1084_s0, %s589_s30 }
  0x17   : > { %s168_s7 = scalar_lea.vmem [#allocation2], %s572_s29  ;;  %s177_s9 = sshll.u32 %s175_s6, 4  ;;  %s178_s9 = int_to_ptr.hbm [resolvable:$true] %s177_s9 }
  0x18   : > { %s179_s8 = sshll.u32 %s168_s7, 4  ;;  %p943_p0 = pnand %p612_p13, %p913_p4  ;;  %s180_s8 = int_to_ptr.vmem [resolvable:$true] %s179_s8 }
  0x19   : > { %p577_p1 = scmp.ge.s32.totalorder %s848_s17, 1  ;;  %p205_p2 = scmp.lt.s32.totalorder %s848_s17, 3 }
  0x1a   : > { %s165_s11 = scalar_lea.sflag [#allocation3], %s164_s28  ;;  %s575_s18 = sshll.u32 %s164_s28, 1 }
  0x1b   : > { %601 = dma.hbm_to_vmem [thread:$0]  (!%p943_p0), %s178_s9, 128, %s180_s8, %s165_s11  }
  0x1c   : > { %p206_p3 = pnand %p577_p1, %p205_p2  ;;  %s576_s19 = sshll.u32 %s844_s16, 1 }
  0x1d   : > { %s196_s29 = scalar_lea.hbm %s1085_s1, %s576_s19  ;;  %s190_s30 = scalar_lea.vmem [#allocation5], %s575_s18 }
  0x1e   : > { %s200_s22 = sshll.u32 %s190_s30, 4  ;;  %s198_s4 = sshll.u32 %s196_s29, 4  ;;  %s201_s22 = int_to_ptr.vmem [resolvable:$true] %s200_s22  ;;  %s199_s4 = int_to_ptr.hbm [resolvable:$true] %s198_s4 }
  0x1f   : > { %s187_s5 = scalar_lea.sflag [#allocation6], %s164_s28  ;;  %209 = sbr.rel (%p206_p3) target bundleno = 120 (0x78), region = 28 }
  0x20   : > { %604 = dma.hbm_to_vmem [thread:$0]  (!%p943_p0), %s199_s4, 32, %s201_s22, %s187_s5  }
  0x21   : > { %s958_s6 = sand.u32 (!%p206_p3), 1, %s832_s13  }
  0x22   : > { %s578_s7 = sshll.u32 (!%p206_p3), %s958_s6, 3  ;;  %s212_s8 = scalar_lea.sflag (!%p206_p3), [#allocation3], %s958_s6 }
  0x23   : > { %s215_s9 = scalar_lea.vmem (!%p206_p3), [#allocation2], %s578_s7 }
  0x24   : > { %811 = dma.done.wait (%p919_p8), %s212_s8, 128  }
  0x25   : > { %813 = vsyncadd (%p919_p8), %s212_s8, 4294967168  ;;  %s967_s28 = sshll.u32 %s958_s6, 1  ;;  %s222_s10 = scalar_lea.sflag [#allocation6], %s958_s6 }
  0x26   : > { %s225_s11 = scalar_lea.vmem [#allocation5], %s967_s28 }
  0x27   : > { %815 = dma.done.wait (%p919_p8), %s222_s10, 32  }
  0x28   : > { %817 = vsyncadd (%p919_p8), %s222_s10, 4294967264  ;;  %v271_v0 = vld [vmem:[%s215_s9] sm:$0xff]  ;;  %vm298_vm0 = vcmask 1043456   ;;  %v265_v19 = vlaneseq  ;;  %s989_s24 = scalar_lea.vmem [#allocation7], %s967_s28  ;;  %v850_v23 = vmov 0.0   ;;  %s995_s18 = scalar_lea.vmem [#allocation8], %s967_s28 }
  0x29   : > { %293 = vst [vmem:[#allocation1] ss:$2 sm:$0xff] %v271_v0  ;;  %v851_v24 = vmov 1   ;;  %vm288_vm2 = vcmask 1040384   ;;  %v272_v26 = vld [vmem:[%s225_s11] sm:$0x3] }
  0x2a   : > { %vm984_vm1 = vcmp.lt.s32.totalorder %v265_v19, 256  ;;  %v287_v25 = vrot.slane %v851_v24, 7  ;;  %vm280_vm3 = vcmp.ge.s32.totalorder %v272_v26, 0  ;;  %vm281_vm4 = vcmp.ne.s32.totalorder %v272_v26, 255  ;;  %s585_s19 = sshll.u32 %s840_s15, 1  ;;  %s426_s30 = sshll.u32 %s995_s18, 4  ;;  %s427_s30 = int_to_ptr.vmem [resolvable:$true] %s426_s30 }
  0x2b   : > { %269 = vst.msk [vmem:[%s989_s24] sm:$0x3] %vm984_vm1, %v850_v23  ;;  %vm282_vm5 = vmand %vm280_vm3, %vm281_vm4  ;;  %s424_s29 = scalar_lea.hbm %s1087_s3, %s585_s19  ;;  %v348_v37 = vshrl.u32 %v265_v19, 7  ;;  %v349_v40 = vperm.slane %v272_v26, 0  ;;  %v350_v41 = vperm.slane %v272_v26, 1  ;;  %s400_s4 = scalar_lea.sflag [#allocation9], %s958_s6 }
  0x2c   : > { %270 = vst.msk [vmem:[%s995_s18] sm:$0x3] %vm984_vm1, %v850_v23  ;;  %v289_v27 = vsel %vm288_vm2, 1, %v287_v25  ;;  %s428_s22 = sshll.u32 %s424_s29, 4  ;;  %s750_s28 = scalar_lea.hbm %s1087_s3, 4  ;;  %s429_s22 = int_to_ptr.hbm [resolvable:$true] %s428_s22 }
  0x2d   : > { %vm290_vm6 = vcmp.ne.s32.totalorder %v289_v27, 0  ;;  %s744_s5 = sshra.s32 %s429_s22, 4  ;;  %s745_s5 = int_to_ptr.hbm [resolvable:$true] %s744_s5 }
  0x2e   : > { %vm1009_vm7 = vmand %vm282_vm5, %vm290_vm6  ;;  %s746_s7 = scalar_lea.hbm %s745_s5, 2  ;;  %p751_p7 = scmp.lt.s32.totalorder %s745_s5, %s1087_s3 }
  0x2f   : > { %v582_v30 = vsel %vm1009_vm7, 1.0, %v850_v23  ;;  %p747_p4 = scmp.ne.s32.totalorder %s745_s5, %s746_s7  ;;  %p752_p8 = scmp.lt.s32.totalorder %s750_s28, %s746_s7 }
  0x30   : > { %v294_v1 = vld.sshfl [vmem:[#allocation1] sm:$0xff pattern:$0x75316420]  ;;  %v295_v2 = vld.sshfl [vmem:[#allocation1 + $0x8] sm:$0xff pattern:$0x75316420] }
  0x31   : > { %v299_v3 = vsel %vm298_vm0, %v294_v1, -inf  ;;  %v306_v4 = vsel %vm298_vm0, %v295_v2, -inf  ;;  %p748_p5 = pnand %p747_p4, %p923_p9  ;;  %p753_p10 = por %p752_p8, %p751_p7 }
  0x32   : > { %v300_v5 = vrot.slane %v299_v3, 4  ;;  %v307_v6 = vrot.slane %v306_v4, 4 }
  0x33   : > { %v389_v31 = vld [vmem:[%s995_s18] sm:$0x3]  ;;  %p749_p6 = pneg %p748_p5 }
  0x34   : > { %v301_v7 = vmax.f32 %v299_v3, %v300_v5  ;;  %v308_v8 = vmax.f32 %v306_v4, %v307_v6  ;;  %v392_v34 = vadd.f32 %v582_v30, %v389_v31 }
  0x35   : > { %p754_p13 = pnand %p753_p10, %p749_p6 }
  0x36   : > { %v302_v9 = vrot.slane %v301_v7, 2  ;;  %v309_v10 = vrot.slane %v308_v8, 2  ;;  %393 = vst.msk [vmem:[%s995_s18] sm:$0x3] %vm984_vm1, %v392_v34 }
  0x38   : > { %v303_v11 = vmax.f32 %v301_v7, %v302_v9  ;;  %v310_v12 = vmax.f32 %v308_v8, %v309_v10 }
  0x3a   : > { %v304_v13 = vrot.slane %v303_v11, 1  ;;  %v311_v14 = vrot.slane %v310_v12, 1 }
  0x3c   : > { %v977_v15 = vmax.f32 %v310_v12, %v311_v14  ;;  %v979_v16 = vmax.f32 %v303_v11, %v304_v13 }
  0x3e   : > { %v315_v17 = vrot.slane %v977_v15, 4 }
  0x40   : > { %v316_v18 = vsel %vm298_vm0, %v979_v16, %v315_v17 }
  0x41   : > { %v318_v20 = vsub.f32 %v271_v0, %v316_v18 }
  0x43   : > { %v319_v22 = vmul.f32 1.442695, %v318_v20 }
  0x45   : > { %664 = vpow2.f32 %v319_v22 }
  0x4b   : > { %v665_v28 = vpop.eup %664 }
  0x4c   : > { %322 = vst [vmem:[#allocation1] ss:$2 sm:$0xff] %v665_v28 }
  0x53   : > { %v323_v32 = vld.sshfl [vmem:[#allocation1] sm:$0xff pattern:$0x75316420]  ;;  %v324_v33 = vld.sshfl [vmem:[#allocation1 + $0x8] sm:$0xff pattern:$0x75316420] }
  0x54   : > { %v327_v35 = vsel %vm298_vm0, %v323_v32, 0.0  ;;  %v334_v36 = vsel %vm298_vm0, %v324_v33, 0.0  ;;  %353 = vst [vmem:[#allocation1] ss:$2 sm:$0xff] %v271_v0 }
  0x55   : > { %v328_v38 = vrot.slane %v327_v35, 4  ;;  %v335_v39 = vrot.slane %v334_v36, 4 }
  0x56   : > { %757 = shalt.err (!%p754_p13)
}
  0x57   : > { %595 = dma.vmem_to_hbm [thread:$0]  (%p923_p9), %s427_s30, 32, %s429_s22, %s400_s4   ;;  %v329_v42 = vadd.f32 %v328_v38, %v327_v35  ;;  %v336_v43 = vadd.f32 %v335_v39, %v334_v36  ;;  %vm351_vm8 = vcmp.eq.s32.totalorder %v348_v37, %v349_v40  ;;  %vm352_vm9 = vcmp.eq.s32.totalorder %v348_v37, %v350_v41  ;;  %v374_v17 = vld [vmem:[%s989_s24] sm:$0x3] }
  0x58   : > { %s410_s23 = scalar_lea.hbm %s1086_s2, %s585_s19  ;;  %s412_s29 = sshll.u32 %s989_s24, 4  ;;  %s413_s29 = int_to_ptr.vmem [resolvable:$true] %s412_s29 }
  0x59   : > { %v330_v44 = vrot.slane %v329_v42, 2  ;;  %v337_v45 = vrot.slane %v336_v43, 2  ;;  %s414_s30 = sshll.u32 %s410_s23, 4  ;;  %s395_s15 = scalar_lea.sflag [#allocation4], %s958_s6  ;;  %s415_s30 = int_to_ptr.hbm [resolvable:$true] %s414_s30 }
  0x5a   : > { %s772_s22 = sshra.s32 %s415_s30, 4  ;;  %s778_s7 = scalar_lea.hbm %s1086_s2, 4  ;;  %s773_s22 = int_to_ptr.hbm [resolvable:$true] %s772_s22 }
  0x5b   : > { %v331_v46 = vadd.f32 %v330_v44, %v329_v42  ;;  %v338_v47 = vadd.f32 %v337_v45, %v336_v43  ;;  %v354_v48 = vld.sshfl [vmem:[#allocation1] sm:$0xff pattern:$0x75316420]  ;;  %v355_v49 = vld.sshfl [vmem:[#allocation1 + $0x8] sm:$0xff pattern:$0x75316420]  ;;  %p779_p3 = scmp.lt.s32.totalorder %s773_s22, %s1086_s2 }
  0x5c   : > { %v358_v50 = vsel %vm351_vm8, %v354_v48, 0.0  ;;  %v359_v51 = vsel %vm352_vm9, %v355_v49, 0.0  ;;  %s774_s19 = scalar_lea.hbm %s773_s22, 2 }
  0x5d   : > { %v332_v52 = vrot.slane %v331_v46, 1  ;;  %v339_v53 = vrot.slane %v338_v47, 1  ;;  %v360_v54 = vsel %vm298_vm0, %v358_v50, 0.0  ;;  %v367_v55 = vsel %vm298_vm0, %v359_v51, 0.0  ;;  %p775_p0 = scmp.ne.s32.totalorder %s773_s22, %s774_s19  ;;  %p780_p4 = scmp.lt.s32.totalorder %s778_s7, %s774_s19 }
  0x5e   : > { %v361_v56 = vrot.slane %v360_v54, 4  ;;  %v368_v57 = vrot.slane %v367_v55, 4 }
  0x5f   : > { %v333_v58 = vadd.f32 %v332_v52, %v331_v46  ;;  %v340_v59 = vadd.f32 %v339_v53, %v338_v47  ;;  %p776_p1 = pnand %p775_p0, %p923_p9  ;;  %p781_p5 = por %p780_p4, %p779_p3 }
  0x60   : > { %v362_v60 = vadd.f32 %v361_v56, %v360_v54  ;;  %v369_v61 = vadd.f32 %v368_v57, %v367_v55 }
  0x61   : > { %666 = vlog2.f32 %v333_v58  ;;  %p777_p2 = pneg %p776_p1 }
  0x62   : > { %668 = vlog2.f32 %v340_v59  ;;  %v363_v62 = vrot.slane %v362_v60, 2  ;;  %v370_v63 = vrot.slane %v369_v61, 2 }
  0x63   : > { %p782_p6 = pnand %p781_p5, %p777_p2 }
  0x64   : > { %v371_v0 = vadd.f32 %v370_v63, %v369_v61  ;;  %v364_v1 = vadd.f32 %v363_v62, %v362_v60 }
  0x66   : > { %v372_v3 = vrot.slane %v371_v0, 1  ;;  %v365_v7 = vrot.slane %v364_v1, 1 }
  0x67   : > { %v667_v2 = vpop.eup %666 }
  0x68   : > { %v669_v4 = vpop.eup %668  ;;  %v342_v5 = vmul.f32 0.6931472, %v667_v2  ;;  %v373_v10 = vadd.f32 %v372_v3, %v371_v0  ;;  %v366_v11 = vadd.f32 %v365_v7, %v364_v1 }
  0x69   : > { %v344_v6 = vmul.f32 0.6931472, %v669_v4 }
  0x6a   : > { %v345_v8 = vadd.f32 %v342_v5, %v979_v16 }
  0x6b   : > { %v346_v9 = vadd.f32 %v344_v6, %v977_v15 }
  0x6c   : > { %v375_v13 = vsub.f32 %v345_v8, %v366_v11 }
  0x6d   : > { %v376_v12 = vsub.f32 %v346_v9, %v373_v10 }
  0x6f   : > { %v379_v14 = vrot.slane %v376_v12, 7 }
  0x71   : > { %v380_v16 = vsel %vm288_vm2, %v375_v13, %v379_v14 }
  0x72   : > { %v382_v15 = vsel %vm1009_vm7, %v380_v16, 0.0 }
  0x73   : > { %v383_v18 = vadd.f32 %v382_v15, %v374_v17 }
  0x75   : > { %388 = vst.msk [vmem:[%s989_s24] sm:$0x3] %vm984_vm1, %v383_v18 }
  0x76   : > { %785 = shalt.err (!%p782_p6)
}
  0x77   : > { %594 = dma.vmem_to_hbm [thread:$0]  (%p923_p9), %s413_s29, 32, %s415_s30, %s395_s15  }
  0x78 PF: > { %s440_s6 = sand.u32 1, %s828_s12   ;;  %p606_p7 = pnand %p571_p12, %p930_p11 }
  0x79   : > { %s441_s24 = scalar_lea.sflag [#allocation4], %s440_s6 }
  0x7a   : > { %p607_p8 = pneg %p606_p7 }
  0x7c   : > { %819 = dma.done.wait (%p607_p8), %s441_s24, 32  }
  0x7d   : > { %821 = vsyncadd (%p607_p8), %s441_s24, 4294967264  ;;  %s451_s28 = scalar_lea.sflag [#allocation9], %s440_s6 }
  0x7e   : > { %823 = dma.done.wait (%p607_p8), %s451_s28, 32  }
  0x7f   : > { %825 = vsyncadd (%p607_p8), %s451_s28, 4294967264  ;;  %s26_s17 = sadd.s32 1, %s848_s17   ;;  %s1097_s12 = smov %s832_s13 }
  0x80   : > { %p23_p10 = scmp.ge.s32.totalorder %s26_s17, 4   ;;  %s1098_s13 = smov %s836_s14 }
  0x81   : > { %s1099_s14 = smov %s928_s26  ;;  %s1100_s15 = smov %s844_s16 }
  0x82   : > { %s1101_s16 = smov %s1103_s20  ;;  %25 = sbr.rel (!%p23_p10) target bundleno = 10 (0xa), region = 107 }
  0x87   :  { %457 = vsyncpa [#allocation3], 1 }
  0x88   :  { %459 = vsyncpa [#allocation3 + $0x1], 1 }
  0x89   :  { %460 = vsyncpa [#allocation6], 1 }
  0x8a   :  { %462 = vsyncpa [#allocation6 + $0x1], 1 }
  0x8b   :  { %463 = vsyncpa [#allocation4], 1 }
  0x8c   :  { %465 = vsyncpa [#allocation4 + $0x1], 1 }
  0x8d   :  { %466 = vsyncpa [#allocation9], 1 }
  0x8e   :  { %468 = vsyncpa [#allocation9 + $0x1], 1 }

</bundles_post_ra>
